<compile_context>
chip_gen: v6e
topology: v6e:2x2x1
jax: 0.10.0
libtpu: 0.0.40
codegen_flags: <defaults>
</compile_context>

<pallas_src>
import functools

import jax
import jax.numpy as jnp
from jax.experimental import pallas as pl
from jax.experimental.pallas import tpu as pltpu

BN_EPS = 1e-5


def _make_kernel(K, pad, pool, B_tile, L1, L2, Lm, Lpool):
    def kernel(x_ref, w1_ref, sb1_ref, w2_ref, sb2_ref, sel_ref, pool_ref, skip_ref):
        # Per-step loads (weights / folded-BN / selection matrix are grid-invariant blocks).
        w1 = w1_ref[...]                     # (Cout, K*Cin)  f32
        w2 = w2_ref[...]                     # (Cout, K*Cout) f32
        sel = sel_ref[...]                   # (Lm, Lpool)    f32 0/1 selection
        sb1 = sb1_ref[...]                   # (Cout, 2)
        sb2 = sb2_ref[...]                   # (Cout, 2)
        scale1, bias1 = sb1[:, 0:1], sb1[:, 1:2]
        scale2, bias2 = sb2[:, 0:1], sb2[:, 1:2]

        def pad_lanes(v):
            # Zero-pad along the length (lane) axis, in registers.
            if pad == 0:
                return v
            z = jnp.zeros((v.shape[0], pad), v.dtype)
            return jnp.concatenate([z, v, z], axis=1)

        def taps(v, lout):
            # (C, Lp) -> (K*C, lout) where row k*C + c = v[c, k:k+lout]
            # (im2col-lite: the conv becomes one wide-contraction MXU matmul).
            return jnp.concatenate([v[:, k:k + lout] for k in range(K)], axis=0)

        # ---- Conv1d #1 + folded BN + ReLU (all batch items fused along lanes) ----
        a1 = jnp.concatenate(
            [taps(pad_lanes(x_ref[b].astype(jnp.float32)), L1) for b in range(B_tile)],
            axis=1)                                                  # (K*Cin, B_tile*L1)
        y1 = jnp.dot(w1, a1, preferred_element_type=jnp.float32)
        y1 = jnp.maximum(y1 * scale1 + bias1, 0.0)                   # (Cout, B_tile*L1)

        # ---- Conv1d #2 + folded BN + ReLU ----
        a2 = jnp.concatenate(
            [taps(pad_lanes(y1[:, b * L1:(b + 1) * L1]), L2) for b in range(B_tile)],
            axis=1)                                                  # (K*Cout, B_tile*L2)
        y2 = jnp.dot(w2, a2, preferred_element_type=jnp.float32)
        y2 = jnp.maximum(y2 * scale2 + bias2, 0.0)                   # (Cout, B_tile*L2)

        # ---- Per-item lane-dense writeback + MaxPool1d(pool) ----
        for b in range(B_tile):
            y2b = y2[:, b * L2:(b + 1) * L2]                         # (Cout, L2)
            skip_ref[b] = y2b.astype(skip_ref.dtype)

            # window max over the pool window (stride-1 shifted slices only)
            m = y2b[:, 0:Lm]
            for r in range(1, pool):
                m = jnp.maximum(m, y2b[:, r:r + Lm])
            # exact strided selection of columns j*pool via a 0/1 matmul
            pooled = jnp.dot(m, sel, preferred_element_type=jnp.float32)  # (Cout, Lpool)
            pool_ref[b] = pooled.astype(pool_ref.dtype)

    return kernel


@functools.partial(jax.jit, static_argnames=("kernel_size", "padding", "pool_size"))
def downblock_forward(x, params, *, kernel_size, padding, pool_size):
    """x: (N, Cin, L) float32 (PyTorch NCL).  Returns (pooled, skip), both NCL."""
    N, Cin, L = x.shape
    K, pad, pool = kernel_size, padding, pool_size
    Cout = params["w1"].shape[0]
    L1 = L + 2 * pad - K + 1
    L2 = L1 + 2 * pad - K + 1
    Lpool = L2 // pool
    Lm = L2 - pool + 1

    # Weight slabs (Cout, K*Cin) / (Cout, K*Cout): w1f[co, k*Cin + ci] = w1[co, ci, k]
    w1f = jnp.transpose(params["w1"], (0, 2, 1)).reshape(Cout, K * Cin).astype(jnp.float32)
    w2f = jnp.transpose(params["w2"], (0, 2, 1)).reshape(Cout, K * Cout).astype(jnp.float32)

    def fold(b, gamma, beta, mean, var):
        # Eval-mode BN + conv bias folded into per-channel scale/bias (exact).
        scale = gamma / jnp.sqrt(var + BN_EPS)
        bias = beta + (b - mean) * scale
        return jnp.stack([scale, bias], axis=1).astype(jnp.float32)   # (Cout, 2)

    sb1 = fold(params["b1"], params["g1"], params["be1"], params["m1"], params["v1"])
    sb2 = fold(params["b2"], params["g2"], params["be2"], params["m2"], params["v2"])

    # 0/1 selection matrix: pooled[:, j] = window_max[:, j*pool]  (exact, one small matmul).
    sel = (jnp.arange(Lm)[:, None] == (jnp.arange(Lpool) * pool)[None, :]).astype(jnp.float32)

    # Batch items per grid step: amortize per-step overhead & densify lanes, bounded unroll,
    # bounded VMEM footprint, must divide N.
    per_item_f32 = (Cin * (L + 2 * pad) + K * Cin * L1 + 2 * Cout * L1
                    + K * Cout * L2 + 3 * Cout * L2 + Cout * Lpool)
    budget_bytes = 4 << 20
    max_tile = max(1, min(N, 8, budget_bytes // max(4 * per_item_f32, 1)))
    B_tile = 1
    for t in range(max_tile, 0, -1):
        if N % t == 0:
            B_tile = t
            break

    kernel = _make_kernel(K, pad, pool, B_tile, L1, L2, Lm, Lpool)

    pooled, skip = pl.pallas_call(
        kernel,
        out_shape=(
            jax.ShapeDtypeStruct((N, Cout, Lpool), x.dtype),
            jax.ShapeDtypeStruct((N, Cout, L2), x.dtype),
        ),
        grid_spec=pltpu.PrefetchScalarGridSpec(
            num_scalar_prefetch=0,
            grid=(N // B_tile,),
            in_specs=[
                pl.BlockSpec((B_tile, Cin, L), lambda n: (n, 0, 0)),
                pl.BlockSpec((Cout, K * Cin), lambda n: (0, 0)),
                pl.BlockSpec((Cout, 2), lambda n: (0, 0)),
                pl.BlockSpec((Cout, K * Cout), lambda n: (0, 0)),
                pl.BlockSpec((Cout, 2), lambda n: (0, 0)),
                pl.BlockSpec((Lm, Lpool), lambda n: (0, 0)),
            ],
            out_specs=[
                pl.BlockSpec((B_tile, Cout, Lpool), lambda n: (n, 0, 0)),
                pl.BlockSpec((B_tile, Cout, L2), lambda n: (n, 0, 0)),
            ],
        ),
        compiler_params=pltpu.CompilerParams(dimension_semantics=("parallel",)),
    )(x, w1f, sb1, w2f, sb2, sel)
    return pooled, skip


def _reference_forward(x, params, kernel_size, padding, pool_size):
    """Pure-JAX reference (eval-mode PyTorch semantics) for validation."""
    def conv_bn_relu(h, w, b, gamma, beta, mean, var):
        y = jax.lax.conv_general_dilated(
            h, w, window_strides=(1,), padding=[(padding, padding)],
            dimension_numbers=("NCH", "OIH", "NCH"))
        y = y + b[None, :, None]
        y = (y - mean[None, :, None]) / jnp.sqrt(var[None, :, None] + BN_EPS)
        y = y * gamma[None, :, None] + beta[None, :, None]
        return jnp.maximum(y, 0.0)

    h = conv_bn_relu(x, params["w1"], params["b1"], params["g1"], params["be1"],
                     params["m1"], params["v1"])
    h = conv_bn_relu(h, params["w2"], params["b2"], params["g2"], params["be2"],
                     params["m2"], params["v2"])
    skip = h
    N, C, L2 = h.shape
    Lpool = L2 // pool_size
    pooled = jnp.max(h[:, :, :Lpool * pool_size].reshape(N, C, Lpool, pool_size), axis=-1)
    return pooled, skip


if __name__ == "__main__":
    # Small shapes consistent with the module: batch=2, in_channels=4, out_channels=8,
    # length=16, kernel_size=3, padding=1, pool_size=2, dropout=0.1 (identity in eval).
    N, Cin, Cout, L = 2, 4, 8, 16
    K, pad, pool = 3, 1, 2

    key = jax.random.PRNGKey(0)
    ks = jax.random.split(key, 12)
    x = jax.random.normal(ks[0], (N, Cin, L), jnp.float32)

    params = {
        "w1": 0.2 * jax.random.normal(ks[1], (Cout, Cin, K), jnp.float32),
        "b1": 0.1 * jax.random.normal(ks[2], (Cout,), jnp.float32),
        "g1": 1.0 + 0.1 * jax.random.normal(ks[3], (Cout,), jnp.float32),
        "be1": 0.1 * jax.random.normal(ks[4], (Cout,), jnp.float32),
        "m1": 0.05 * jax.random.normal(ks[5], (Cout,), jnp.float32),
        "v1": 1.0 + 0.1 * jax.nn.softplus(jax.random.normal(ks[6], (Cout,), jnp.float32)),
        "w2": 0.2 * jax.random.normal(ks[7], (Cout, Cout, K), jnp.float32),
        "b2": 0.1 * jax.random.normal(ks[8], (Cout,), jnp.float32),
        "g2": 1.0 + 0.1 * jax.random.normal(ks[9], (Cout,), jnp.float32),
        "be2": 0.1 * jax.random.normal(ks[10], (Cout,), jnp.float32),
        "m2": 0.05 * jax.random.normal(ks[11], (Cout,), jnp.float32),
        "v2": jnp.full((Cout,), 1.2, jnp.float32),
    }

    pooled, skip = downblock_forward(x, params, kernel_size=K, padding=pad, pool_size=pool)
    jax.block_until_ready((pooled, skip))

    pooled_ref, skip_ref = _reference_forward(x, params, K, pad, pool)
    L1 = L + 2 * pad - K + 1
    L2 = L1 + 2 * pad - K + 1
    assert pooled.shape == (N, Cout, L2 // pool)
    assert skip.shape == (N, Cout, L2)
    assert jnp.allclose(pooled, pooled_ref, atol=1e-4, rtol=1e-4)
    assert jnp.allclose(skip, skip_ref, atol=1e-4, rtol=1e-4)

    print("KERNEL_OK")
</pallas_src>

<mosaic_0001>
module attributes {stable_mosaic.version = 11 : i64} {
  func.func @kernel(%arg0: i32, %arg1: memref<2x4x16xf32, #tpu.memory_space<vmem>>, %arg2: memref<8x12xf32, #tpu.memory_space<vmem>>, %arg3: memref<8x2xf32, #tpu.memory_space<vmem>>, %arg4: memref<8x24xf32, #tpu.memory_space<vmem>>, %arg5: memref<8x2xf32, #tpu.memory_space<vmem>>, %arg6: memref<15x8xf32, #tpu.memory_space<vmem>>, %arg7: memref<2x8x8xf32, #tpu.memory_space<vmem>>, %arg8: memref<2x8x16xf32, #tpu.memory_space<vmem>>) attributes {dimension_semantics = [#tpu.dimension_semantics<parallel>], iteration_bounds = array<i64: 1>, scalar_prefetch = 0 : i64, scratch_operands = 0 : i64, tpu.core_type = #tpu.core_type<tc>, window_params = [{transform_indices = @transform_0, window_bounds = array<i64: 2, 4, 16>}, {pipeline_mode = #tpu.pipeline_mode<synchronous>, transform_indices = @transform_1, window_bounds = array<i64: 8, 12>}, {pipeline_mode = #tpu.pipeline_mode<synchronous>, transform_indices = @transform_2, window_bounds = array<i64: 8, 2>}, {pipeline_mode = #tpu.pipeline_mode<synchronous>, transform_indices = @transform_3, window_bounds = array<i64: 8, 24>}, {pipeline_mode = #tpu.pipeline_mode<synchronous>, transform_indices = @transform_4, window_bounds = array<i64: 8, 2>}, {pipeline_mode = #tpu.pipeline_mode<synchronous>, transform_indices = @transform_5, window_bounds = array<i64: 15, 8>}, {transform_indices = @transform_6, window_bounds = array<i64: 2, 8, 8>}, {transform_indices = @transform_7, window_bounds = array<i64: 2, 8, 16>}]} {
    %c0 = arith.constant 0 : index
    %c0_0 = arith.constant 0 : index
    %0 = vector.load %arg2[%c0, %c0_0] : memref<8x12xf32, #tpu.memory_space<vmem>>, vector<8x12xf32>
    %c0_1 = arith.constant 0 : index
    %c0_2 = arith.constant 0 : index
    %1 = vector.load %arg4[%c0_1, %c0_2] : memref<8x24xf32, #tpu.memory_space<vmem>>, vector<8x24xf32>
    %c0_3 = arith.constant 0 : index
    %c0_4 = arith.constant 0 : index
    %2 = vector.load %arg6[%c0_3, %c0_4] : memref<15x8xf32, #tpu.memory_space<vmem>>, vector<15x8xf32>
    %c0_5 = arith.constant 0 : index
    %c0_6 = arith.constant 0 : index
    %3 = vector.load %arg3[%c0_5, %c0_6] : memref<8x2xf32, #tpu.memory_space<vmem>>, vector<8x2xf32>
    %c0_7 = arith.constant 0 : index
    %c0_8 = arith.constant 0 : index
    %4 = vector.load %arg5[%c0_7, %c0_8] : memref<8x2xf32, #tpu.memory_space<vmem>>, vector<8x2xf32>
    %5 = vector.extract_strided_slice %3 {offsets = [0, 0], sizes = [8, 1], strides = [1, 1]} : vector<8x2xf32> to vector<8x1xf32>
    %6 = vector.extract_strided_slice %3 {offsets = [0, 1], sizes = [8, 1], strides = [1, 1]} : vector<8x2xf32> to vector<8x1xf32>
    %7 = vector.extract_strided_slice %4 {offsets = [0, 0], sizes = [8, 1], strides = [1, 1]} : vector<8x2xf32> to vector<8x1xf32>
    %8 = vector.extract_strided_slice %4 {offsets = [0, 1], sizes = [8, 1], strides = [1, 1]} : vector<8x2xf32> to vector<8x1xf32>
    %c0_9 = arith.constant 0 : index
    %c0_10 = arith.constant 0 : index
    %c0_11 = arith.constant 0 : index
    %9 = vector.load %arg1[%c0_9, %c0_10, %c0_11] : memref<2x4x16xf32, #tpu.memory_space<vmem>>, vector<1x4x16xf32>
    %10 = vector.shape_cast %9 : vector<1x4x16xf32> to vector<4x16xf32>
    %cst = arith.constant 0.000000e+00 : f32
    %11 = vector.broadcast %cst : f32 to vector<4x1xf32>
    %12 = tpu.concatenate %11, %10, %11 in 1 : vector<4x1xf32>, vector<4x16xf32>, vector<4x1xf32> -> vector<4x18xf32>
    %13 = vector.extract_strided_slice %12 {offsets = [0, 0], sizes = [4, 16], strides = [1, 1]} : vector<4x18xf32> to vector<4x16xf32>
    %14 = vector.extract_strided_slice %12 {offsets = [0, 1], sizes = [4, 16], strides = [1, 1]} : vector<4x18xf32> to vector<4x16xf32>
    %15 = vector.extract_strided_slice %12 {offsets = [0, 2], sizes = [4, 16], strides = [1, 1]} : vector<4x18xf32> to vector<4x16xf32>
    %16 = tpu.concatenate %13, %14, %15 in 0 : vector<4x16xf32>, vector<4x16xf32>, vector<4x16xf32> -> vector<12x16xf32>
    %c1 = arith.constant 1 : index
    %c0_12 = arith.constant 0 : index
    %c0_13 = arith.constant 0 : index
    %17 = vector.load %arg1[%c1, %c0_12, %c0_13] : memref<2x4x16xf32, #tpu.memory_space<vmem>>, vector<1x4x16xf32>
    %18 = vector.shape_cast %17 : vector<1x4x16xf32> to vector<4x16xf32>
    %cst_14 = arith.constant 0.000000e+00 : f32
    %19 = vector.broadcast %cst_14 : f32 to vector<4x1xf32>
    %20 = tpu.concatenate %19, %18, %19 in 1 : vector<4x1xf32>, vector<4x16xf32>, vector<4x1xf32> -> vector<4x18xf32>
    %21 = vector.extract_strided_slice %20 {offsets = [0, 0], sizes = [4, 16], strides = [1, 1]} : vector<4x18xf32> to vector<4x16xf32>
    %22 = vector.extract_strided_slice %20 {offsets = [0, 1], sizes = [4, 16], strides = [1, 1]} : vector<4x18xf32> to vector<4x16xf32>
    %23 = vector.extract_strided_slice %20 {offsets = [0, 2], sizes = [4, 16], strides = [1, 1]} : vector<4x18xf32> to vector<4x16xf32>
    %24 = tpu.concatenate %21, %22, %23 in 0 : vector<4x16xf32>, vector<4x16xf32>, vector<4x16xf32> -> vector<12x16xf32>
    %25 = tpu.concatenate %16, %24 in 1 : vector<12x16xf32>, vector<12x16xf32> -> vector<12x32xf32>
    %cst_15 = arith.constant dense<0.000000e+00> : vector<8x32xf32>
    %26 = tpu.matmul %0, %25, %cst_15 {dimension_numbers = #tpu.dot_dimension_numbers<[1], [0], [0], [1], [0, 0, 1, 1], [], []>} : vector<8x12xf32>, vector<12x32xf32>, vector<8x32xf32> -> vector<8x32xf32>
    %27 = vector.broadcast %5 : vector<8x1xf32> to vector<8x32xf32>
    %28 = arith.mulf %26, %27 : vector<8x32xf32>
    %29 = vector.broadcast %6 : vector<8x1xf32> to vector<8x32xf32>
    %30 = arith.addf %28, %29 : vector<8x32xf32>
    %cst_16 = arith.constant 0.000000e+00 : f32
    %31 = vector.broadcast %cst_16 : f32 to vector<8x32xf32>
    %32 = arith.maximumf %30, %31 : vector<8x32xf32>
    %33 = vector.extract_strided_slice %32 {offsets = [0, 0], sizes = [8, 16], strides = [1, 1]} : vector<8x32xf32> to vector<8x16xf32>
    %cst_17 = arith.constant 0.000000e+00 : f32
    %34 = vector.broadcast %cst_17 : f32 to vector<8x1xf32>
    %35 = tpu.concatenate %34, %33, %34 in 1 : vector<8x1xf32>, vector<8x16xf32>, vector<8x1xf32> -> vector<8x18xf32>
    %36 = vector.extract_strided_slice %35 {offsets = [0, 0], sizes = [8, 16], strides = [1, 1]} : vector<8x18xf32> to vector<8x16xf32>
    %37 = vector.extract_strided_slice %35 {offsets = [0, 1], sizes = [8, 16], strides = [1, 1]} : vector<8x18xf32> to vector<8x16xf32>
    %38 = vector.extract_strided_slice %35 {offsets = [0, 2], sizes = [8, 16], strides = [1, 1]} : vector<8x18xf32> to vector<8x16xf32>
    %39 = tpu.concatenate %36, %37, %38 in 0 : vector<8x16xf32>, vector<8x16xf32>, vector<8x16xf32> -> vector<24x16xf32>
    %40 = vector.extract_strided_slice %32 {offsets = [0, 16], sizes = [8, 16], strides = [1, 1]} : vector<8x32xf32> to vector<8x16xf32>
    %cst_18 = arith.constant 0.000000e+00 : f32
    %41 = vector.broadcast %cst_18 : f32 to vector<8x1xf32>
    %42 = tpu.concatenate %41, %40, %41 in 1 : vector<8x1xf32>, vector<8x16xf32>, vector<8x1xf32> -> vector<8x18xf32>
    %43 = vector.extract_strided_slice %42 {offsets = [0, 0], sizes = [8, 16], strides = [1, 1]} : vector<8x18xf32> to vector<8x16xf32>
    %44 = vector.extract_strided_slice %42 {offsets = [0, 1], sizes = [8, 16], strides = [1, 1]} : vector<8x18xf32> to vector<8x16xf32>
    %45 = vector.extract_strided_slice %42 {offsets = [0, 2], sizes = [8, 16], strides = [1, 1]} : vector<8x18xf32> to vector<8x16xf32>
    %46 = tpu.concatenate %43, %44, %45 in 0 : vector<8x16xf32>, vector<8x16xf32>, vector<8x16xf32> -> vector<24x16xf32>
    %47 = tpu.concatenate %39, %46 in 1 : vector<24x16xf32>, vector<24x16xf32> -> vector<24x32xf32>
    %cst_19 = arith.constant dense<0.000000e+00> : vector<8x32xf32>
    %48 = tpu.matmul %1, %47, %cst_19 {dimension_numbers = #tpu.dot_dimension_numbers<[1], [0], [0], [1], [0, 0, 1, 1], [], []>} : vector<8x24xf32>, vector<24x32xf32>, vector<8x32xf32> -> vector<8x32xf32>
    %49 = vector.broadcast %7 : vector<8x1xf32> to vector<8x32xf32>
    %50 = arith.mulf %48, %49 : vector<8x32xf32>
    %51 = vector.broadcast %8 : vector<8x1xf32> to vector<8x32xf32>
    %52 = arith.addf %50, %51 : vector<8x32xf32>
    %cst_20 = arith.constant 0.000000e+00 : f32
    %53 = vector.broadcast %cst_20 : f32 to vector<8x32xf32>
    %54 = arith.maximumf %52, %53 : vector<8x32xf32>
    %55 = vector.extract_strided_slice %54 {offsets = [0, 0], sizes = [8, 16], strides = [1, 1]} : vector<8x32xf32> to vector<8x16xf32>
    %c0_21 = arith.constant 0 : index
    %c0_22 = arith.constant 0 : index
    %c0_23 = arith.constant 0 : index
    %56 = vector.load %arg8[%c0_21, %c0_22, %c0_23] : memref<2x8x16xf32, #tpu.memory_space<vmem>>, vector<1x8x16xf32>
    %57 = vector.shape_cast %56 : vector<1x8x16xf32> to vector<8x16xf32>
    %58 = vector.shape_cast %55 : vector<8x16xf32> to vector<1x8x16xf32>
    tpu.vector_store %arg8[%c0_21, %c0_22, %c0_23], %58 {strides = array<i32>} : memref<2x8x16xf32, #tpu.memory_space<vmem>>, vector<1x8x16xf32>,
    %59 = vector.extract_strided_slice %55 {offsets = [0, 0], sizes = [8, 15], strides = [1, 1]} : vector<8x16xf32> to vector<8x15xf32>
    %60 = vector.extract_strided_slice %55 {offsets = [0, 1], sizes = [8, 15], strides = [1, 1]} : vector<8x16xf32> to vector<8x15xf32>
    %61 = arith.maximumf %59, %60 : vector<8x15xf32>
    %cst_24 = arith.constant dense<0.000000e+00> : vector<8x8xf32>
    %62 = tpu.matmul %61, %2, %cst_24 {dimension_numbers = #tpu.dot_dimension_numbers<[1], [0], [0], [1], [0, 0, 1, 1], [], []>} : vector<8x15xf32>, vector<15x8xf32>, vector<8x8xf32> -> vector<8x8xf32>
    %c0_25 = arith.constant 0 : index
    %c0_26 = arith.constant 0 : index
    %c0_27 = arith.constant 0 : index
    %63 = vector.load %arg7[%c0_25, %c0_26, %c0_27] : memref<2x8x8xf32, #tpu.memory_space<vmem>>, vector<1x8x8xf32>
    %64 = vector.shape_cast %63 : vector<1x8x8xf32> to vector<8x8xf32>
    %65 = vector.shape_cast %62 : vector<8x8xf32> to vector<1x8x8xf32>
    tpu.vector_store %arg7[%c0_25, %c0_26, %c0_27], %65 {strides = array<i32>} : memref<2x8x8xf32, #tpu.memory_space<vmem>>, vector<1x8x8xf32>,
    %66 = vector.extract_strided_slice %54 {offsets = [0, 16], sizes = [8, 16], strides = [1, 1]} : vector<8x32xf32> to vector<8x16xf32>
    %c1_28 = arith.constant 1 : index
    %c0_29 = arith.constant 0 : index
    %c0_30 = arith.constant 0 : index
    %67 = vector.load %arg8[%c1_28, %c0_29, %c0_30] : memref<2x8x16xf32, #tpu.memory_space<vmem>>, vector<1x8x16xf32>
    %68 = vector.shape_cast %67 : vector<1x8x16xf32> to vector<8x16xf32>
    %69 = vector.shape_cast %66 : vector<8x16xf32> to vector<1x8x16xf32>
    tpu.vector_store %arg8[%c1_28, %c0_29, %c0_30], %69 {strides = array<i32>} : memref<2x8x16xf32, #tpu.memory_space<vmem>>, vector<1x8x16xf32>,
    %70 = vector.extract_strided_slice %66 {offsets = [0, 0], sizes = [8, 15], strides = [1, 1]} : vector<8x16xf32> to vector<8x15xf32>
    %71 = vector.extract_strided_slice %66 {offsets = [0, 1], sizes = [8, 15], strides = [1, 1]} : vector<8x16xf32> to vector<8x15xf32>
    %72 = arith.maximumf %70, %71 : vector<8x15xf32>
    %cst_31 = arith.constant dense<0.000000e+00> : vector<8x8xf32>
    %73 = tpu.matmul %72, %2, %cst_31 {dimension_numbers = #tpu.dot_dimension_numbers<[1], [0], [0], [1], [0, 0, 1, 1], [], []>} : vector<8x15xf32>, vector<15x8xf32>, vector<8x8xf32> -> vector<8x8xf32>
    %c1_32 = arith.constant 1 : index
    %c0_33 = arith.constant 0 : index
    %c0_34 = arith.constant 0 : index
    %74 = vector.load %arg7[%c1_32, %c0_33, %c0_34] : memref<2x8x8xf32, #tpu.memory_space<vmem>>, vector<1x8x8xf32>
    %75 = vector.shape_cast %74 : vector<1x8x8xf32> to vector<8x8xf32>
    %76 = vector.shape_cast %73 : vector<8x8xf32> to vector<1x8x8xf32>
    tpu.vector_store %arg7[%c1_32, %c0_33, %c0_34], %76 {strides = array<i32>} : memref<2x8x8xf32, #tpu.memory_space<vmem>>, vector<1x8x8xf32>,
    return
  }
  func.func @transform_0(%arg0: i32) -> (i32, i32, i32) {
    %c0_i32 = arith.constant 0 : i32
    %c0_i32_0 = arith.constant 0 : i32
    %c0_i32_1 = arith.constant 0 : i32
    return %arg0, %c0_i32, %c0_i32_0 : i32, i32, i32
  }
  func.func @transform_1(%arg0: i32) -> (i32, i32) {
    %c0_i32 = arith.constant 0 : i32
    %c0_i32_0 = arith.constant 0 : i32
    %c0_i32_1 = arith.constant 0 : i32
    return %c0_i32, %c0_i32_0 : i32, i32
  }
  func.func @transform_2(%arg0: i32) -> (i32, i32) {
    %c0_i32 = arith.constant 0 : i32
    %c0_i32_0 = arith.constant 0 : i32
    %c0_i32_1 = arith.constant 0 : i32
    return %c0_i32, %c0_i32_0 : i32, i32
  }
  func.func @transform_3(%arg0: i32) -> (i32, i32) {
    %c0_i32 = arith.constant 0 : i32
    %c0_i32_0 = arith.constant 0 : i32
    %c0_i32_1 = arith.constant 0 : i32
    return %c0_i32, %c0_i32_0 : i32, i32
  }
  func.func @transform_4(%arg0: i32) -> (i32, i32) {
    %c0_i32 = arith.constant 0 : i32
    %c0_i32_0 = arith.constant 0 : i32
    %c0_i32_1 = arith.constant 0 : i32
    return %c0_i32, %c0_i32_0 : i32, i32
  }
  func.func @transform_5(%arg0: i32) -> (i32, i32) {
    %c0_i32 = arith.constant 0 : i32
    %c0_i32_0 = arith.constant 0 : i32
    %c0_i32_1 = arith.constant 0 : i32
    return %c0_i32, %c0_i32_0 : i32, i32
  }
  func.func @transform_6(%arg0: i32) -> (i32, i32, i32) {
    %c0_i32 = arith.constant 0 : i32
    %c0_i32_0 = arith.constant 0 : i32
    %c0_i32_1 = arith.constant 0 : i32
    return %arg0, %c0_i32, %c0_i32_0 : i32, i32, i32
  }
  func.func @transform_7(%arg0: i32) -> (i32, i32, i32) {
    %c0_i32 = arith.constant 0 : i32
    %c0_i32_0 = arith.constant 0 : i32
    %c0_i32_1 = arith.constant 0 : i32
    return %arg0, %c0_i32, %c0_i32_0 : i32, i32, i32
  }
}

</mosaic_0001>

<bundles_post_ra>
// kernel: downblock_forward.1
= control target key start
LH: loop header
LB: loop body
LE: loop exit
PB: predicated region body
PF: predicated region fallthrough
CT: control target
= control target key end

     0   :  { %13 = vsyncpa [#allocation3], 0  ;;  %s599_s26 = smov 1   ;;  %s732_s0 = inlined_call_operand.vmem [shape: f32[2,4,16], index: 0, kind: input, shape index: {}]   ;;  %s733_s1 = inlined_call_operand.vmem [shape: f32[8,12], index: 1, kind: input, shape index: {}]   ;;  %s734_s2 = inlined_call_operand.vmem [shape: f32[8,2], index: 2, kind: input, shape index: {}]   ;;  %s735_s3 = inlined_call_operand.vmem [shape: f32[8,24], index: 3, kind: input, shape index: {}]   ;;  %s736_s4 = inlined_call_operand.vmem [shape: f32[8,2], index: 4, kind: input, shape index: {}]   ;;  %s737_s5 = inlined_call_operand.vmem [shape: f32[15,8], index: 5, kind: input, shape index: {}]   ;;  %s738_s6 = inlined_call_operand.hbm [shape: f32[2,8,8], index: 6, kind: output, shape index: {0}]   ;;  %s739_s7 = inlined_call_operand.hbm [shape: f32[2,8,16], index: 7, kind: output, shape index: {1}]  }
   0x1   :  { %v487_v0 = vld [vmem:[%s732_s0 + $0x4] sm:$0xf] }
   0x2   :  { %55 = vrot.lane.b32.xlu0 %v487_v0, %s599_s26 }
   0x3   :  { %14 = vsyncpa [#allocation5], 0  ;;  %v33_v1 = vld [vmem:[%s732_s0] sm:$0xf]  ;;  %vm38_vm0 = vcmask 7168   ;;  %vm40_vm1 = vcmask 138240  }
   0x4   :  { %s600_s29 = smov 126   ;;  %s601_s0 = smov 127   ;;  %v602_v10 = vmov 0.0   ;;  %vm603_vm2 = vmmov 0   ;;  %v31_v11 = vld [vmem:[%s734_s2] sm:$0xff]  ;;  %v604_v12 = vmov 0  }
   0x5   :  { %508 = vmatprep.subr.mxu0 %v602_v10  ;;  %515 = vmatprep.subr.mxu1 %v602_v10  ;;  %v605_v13 = vmov 1   ;;  %s606_s9 = smov 16   ;;  %vm50_vm3 = vcmask 1043456   ;;  %vm75_vm4 = vcmask 130048   ;;  %v27_v23 = vld [vmem:[%s733_s1] sm:$0xff]  ;;  %vm78_vm5 = vcmask 97280  }
   0x6   :  { %35 = vrot.lane.b32.xlu0 %v33_v1, %s599_s26  ;;  %512 = vmatprep.mubr.msk.f32.mxu0 %vm603_vm2, %v602_v10  ;;  %s607_s1 = smov 113   ;;  %v32_v38 = vld [vmem:[%s736_s4] sm:$0xff]  ;;  %vm202_vm6 = vcmask 195584   ;;  %v30_v50 = vld [vmem:[%s737_s5 + $0x8] sm:$0x7f]  ;;  %vm298_vm7 = vcmask 1046528  }
   0x7   :  { %521 = vmatprep.mubr.msk.f32.mxu1 %vm603_vm2, %v602_v10  ;;  %552 = vset.pattern.permute.xlu0 %v604_v12  ;;  %v28_v48 = vld [vmem:[%s735_s3] sm:$0xff]  ;;  %s608_s17 = smov 112   ;;  %vm294_vm8 = vcmask 121856  }
   0x8   :  { %553 = vset.pattern.permute.xlu1 %v605_v13  ;;  %v29_v51 = vld [vmem:[%s737_s5] sm:$0xff]  ;;  %s609_s5 = smov [#allocation4]  }
   0x9   :  { %s472_s18 = sshll.u32 %s609_s5, 4  ;;  %s473_s18 = int_to_ptr.vmem [resolvable:$true] %s472_s18 }
   0xa   :  { %s555_s19 = scalar_lea.vmem %s473_s18, 256  ;;  %p560_p1 = scmp.lt.s32.totalorder %s473_s18, %s473_s18 }
   0xb   :  { %p556_p0 = scmp.ne.s32.totalorder %s473_s18, %s555_s19  ;;  %p561_p2 = scmp.lt.s32.totalorder %s555_s19, %s555_s19 }
   0xd   :  { %p562_p3 = por %p561_p2, %p560_p1 }
   0xf   :  { %p563_p4 = pnand %p562_p3, %p556_p0 }
  0x74   :  { %v56_v2 = vpop.permute.xlu0 %55 }
  0x75   :  { %v58_v3 = vsel %vm38_vm0, 0.0, %v56_v2 }
  0x76   :  { %v59_v4 = vsel %vm40_vm1, %v58_v3, 0.0 }
  0x77   :  { %65 = vrot.lane.b32.xlu1 %v59_v4, %s600_s29  ;;  %v61_v6 = vrot.slane %v59_v4, 4 }
  0x78   :  { %v36_v5 = vpop.permute.xlu0 %35 }
  0x79   :  { %v39_v7 = vsel %vm38_vm0, 0.0, %v36_v5 }
  0x7a   :  { %v41_v8 = vsel %vm40_vm1, %v39_v7, 0.0 }
  0x7b   :  { %v43_v9 = vrot.slane %v41_v8, 4  ;;  %62 = vrot.lane.b32.xlu1 %v61_v6, %s601_s0  ;;  %47 = vrot.lane.b32.xlu0 %v41_v8, %s600_s29 }
  0x7f   :  { %44 = vrot.lane.b32.xlu0 %v43_v9, %s601_s0 }
  0x83   :  { %157 = vperm.xlu0 %552, %v31_v11  }
  0xe9   :  { %v66_v14 = vpop.permute.xlu1 %65 }
  0xea   :  { %71 = vrot.lane.b32.xlu1 %v66_v14, %s606_s9 }
  0xed   :  { %v63_v15 = vpop.permute.xlu1 %62  ;;  %v48_v17 = vpop.permute.xlu0 %47 }
  0xee   :  { %v67_v16 = vsel %vm50_vm3, %v59_v4, %v63_v15 }
  0xef   :  { %69 = vrot.lane.b32.xlu1 %v67_v16, %s606_s9 }
  0xf1   :  { %v45_v20 = vpop.permute.xlu0 %44 }
  0xf2   :  { %v51_v21 = vsel %vm50_vm3, %v41_v8, %v45_v20 }
  0xf3   :  { %162 = vperm.xlu1 %553, %v31_v11  }
  0xfe   :  { %v158_v25 = vpop.permute.xlu0 %157 }
 0x15c   :  { %v72_v18 = vpop.permute.xlu1 %71 }
 0x15d   :  { %v77_v19 = vsel %vm75_vm4, %v48_v17, %v72_v18 }
 0x15e   :  { %509 = vmatpush3.msk.msra.mxu0 %vm50_vm3, %v77_v19 }
 0x15f   :  { %510 = vmatprep.subr.mxu0 %v602_v10 }
 0x161   :  { %v70_v22 = vpop.permute.xlu1 %69 }
 0x162   :  { %v76_v24 = vsel %vm75_vm4, %v51_v21, %v70_v22 }
 0x163   :  { %511 = vmatpush3.msra.mxu0 %v76_v24 }
 0x164   :  { %513 = vmatmul.mubr.msk.f32.vlgmr.msra.gmra.mxu0 %vm78_vm5, %v27_v23  ;;  %524 = vmatprep.subr.mxu0 %v602_v10 }
 0x165   :  { %528 = vmatprep.mubr.msk.f32.mxu0 %vm603_vm2, %v602_v10  ;;  %525 = vmatpush3.msk.msra.mxu0 %vm298_vm7, %v30_v50 }
 0x166   :  { %526 = vmatprep.subr.mxu0 %v602_v10 }
 0x167   :  { %527 = vmatpush3.msra.mxu0 %v29_v51 }
 0x16e   :  { %v163_v27 = vpop.permute.xlu1 %162 }
 0x224   :  { %v151_v26 = vpop.f32.mrf.mxu0 }
 0x225   :  { %v160_v28 = vmul.f32 %v158_v25, %v151_v26 }
 0x226   :  { %v514_v29 = vpop.f32.mrf.mxu0 }
 0x227   :  { %v165_v30 = vadd.f32 %v163_v27, %v160_v28 }
 0x229   :  { %v166_v31 = vmax.f32 %v165_v30, 0.0 }
 0x22b   :  { %168 = vrot.lane.b32.xlu0 %v166_v31, %s599_s26  ;;  %180 = vrot.lane.b32.xlu1 %v166_v31, %s607_s1 }
 0x29d   :  { %v169_v32 = vpop.permute.xlu0 %168  ;;  %v181_v33 = vpop.permute.xlu1 %180 }
 0x29e   :  { %v183_v34 = vsel %vm38_vm0, 0.0, %v181_v33  ;;  %v171_v36 = vsel %vm38_vm0, 0.0, %v169_v32 }
 0x29f   :  { %v184_v35 = vsel %vm40_vm1, %v183_v34, 0.0  ;;  %v172_v37 = vsel %vm40_vm1, %v171_v36, 0.0 }
 0x2a0   :  { %186 = vrot.lane.b32.xlu0 %v184_v35, %s601_s0  ;;  %188 = vrot.lane.b32.xlu1 %v184_v35, %s600_s29 }
 0x2a4   :  { %177 = vrot.lane.b32.xlu1 %v172_v37, %s600_s29 }
 0x2a8   :  { %174 = vrot.lane.b32.xlu1 %v172_v37, %s601_s0 }
 0x2ac   :  { %190 = vrot.lane.b32.xlu1 %v184_v35, %s606_s9 }
 0x2b0   :  { %283 = vperm.xlu1 %553, %v32_v38  }
 0x312   :  { %v189_v39 = vpop.permute.xlu1 %188  ;;  %v187_v40 = vpop.permute.xlu0 %186 }
 0x313   :  { %194 = vrot.lane.b32.xlu0 %v189_v39, %s606_s9 }
 0x316   :  { %v178_v41 = vpop.permute.xlu1 %177 }
 0x317   :  { %192 = vrot.lane.b32.xlu0 %v187_v40, %s606_s9 }
 0x31a   :  { %v175_v42 = vpop.permute.xlu1 %174 }
 0x31b   :  { %278 = vperm.xlu0 %552, %v32_v38  }
 0x31e   :  { %v191_v45 = vpop.permute.xlu1 %190 }
 0x31f   :  { %554 = vset.pattern.permute.xlu0 %v605_v13  ;;  %v199_v49 = vsel %vm75_vm4, %v172_v37, %v191_v45 }
 0x32b   :  { %v284_v55 = vpop.permute.xlu1 %283 }
 0x385   :  { %v195_v43 = vpop.permute.xlu0 %194 }
 0x386   :  { %v201_v44 = vsel %vm75_vm4, %v178_v41, %v195_v43 }
 0x387   :  { %516 = vmatpush3.msra.mxu1 %v201_v44 }
 0x388   :  { %517 = vmatprep.subr.mxu1 %v602_v10 }
 0x389   :  { %v193_v46 = vpop.permute.xlu0 %192 }
 0x38a   :  { %v200_v47 = vsel %vm75_vm4, %v175_v42, %v193_v46 }
 0x38b   :  { %518 = vmatpush3.msra.mxu1 %v200_v47 }
 0x38c   :  { %519 = vmatprep.subr.mxu1 %v602_v10 }
 0x38d   :  { %520 = vmatpush3.msra.mxu1 %v199_v49 }
 0x38e   :  { %522 = vmatmul.mubr.msk.f32.vlgmr.msra.gmra.mxu1 %vm202_vm6, %v28_v48  ;;  %531 = vmatprep.subr.mxu1 %v602_v10 }
 0x38f   :  { %535 = vmatprep.mubr.msk.f32.mxu1 %vm603_vm2, %v602_v10  ;;  %532 = vmatpush3.msk.msra.mxu1 %vm298_vm7, %v30_v50 }
 0x390   :  { %533 = vmatprep.subr.mxu1 %v602_v10 }
 0x391   :  { %534 = vmatpush3.msra.mxu1 %v29_v51 }
 0x396   :  { %v279_v52 = vpop.permute.xlu0 %278 }
 0x44e   :  { %v272_v53 = vpop.f32.mrf.mxu1 }
 0x44f   :  { %v281_v54 = vmul.f32 %v279_v52, %v272_v53 }
 0x450   :  { %v523_v56 = vpop.f32.mrf.mxu1 }
 0x451   :  { %v286_v57 = vadd.f32 %v284_v55, %v281_v54 }
 0x453   :  { %v287_v58 = vmax.f32 %v286_v57, 0.0 }
 0x455   :  { %288 = vst.msk [vmem:[#allocation4] sm:$0xff] %vm75_vm4, %v287_v58  ;;  %290 = vrot.lane.b32.xlu0 %v287_v58, %s601_s0 }
 0x459   :  { %374 = vrot.lane.b32.xlu0 %v287_v58, %s608_s17 }
 0x4c7   :  { %v291_v59 = vpop.permute.xlu0 %290 }
 0x4c8   :  { %v293_v60 = vmax.f32 %v287_v58, %v291_v59 }
 0x4ca   :  { %379 = vrot.lane.b32.xlu1 %v293_v60, %s608_s17  ;;  %529 = vmatmul.mubr.msk.f32.vlgmr.msra.gmra.mxu0 %vm294_vm8, %v293_v60 }
 0x4cb   :  { %v375_v61 = vpop.permute.xlu0 %374 }
 0x4cc   :  { %378 = vst.msk [vmem:[#allocation4 + $0x8] sm:$0xff] %vm75_vm4, %v375_v61 }
 0x53c   :  { %v380_v62 = vpop.permute.xlu1 %379 }
 0x53d   :  { %536 = vmatmul.mubr.msk.f32.vlgmr.msra.gmra.mxu1 %vm294_vm8, %v380_v62 }
 0x53e   :  { %566 = shalt.err (!%p563_p4)
}
 0x53f   :  { %s610_s20 = smov 128   ;;  %s611_s21 = smov 8   ;;  %vm372_vm9 = vcmask 64512  }
 0x540   :  { %478 = dma.vmem_to_hbm [thread:$0]  %s473_s18, 256, %s739_s7, [#allocation5], %s610_s20, %s610_s20, %s611_s21  }
 0x541   :  { %s612_s24 = smov [#allocation2]  }
 0x542   :  { %s460_s25 = sshll.u32 %s612_s24, 4  ;;  %s461_s25 = int_to_ptr.vmem [resolvable:$true] %s460_s25 }
 0x543   :  { %s575_s26 = scalar_lea.vmem %s461_s25, 256  ;;  %p580_p6 = scmp.lt.s32.totalorder %s461_s25, %s461_s25 }
 0x544   :  { %p576_p5 = scmp.ne.s32.totalorder %s461_s25, %s575_s26  ;;  %p581_p7 = scmp.lt.s32.totalorder %s575_s26, %s575_s26 }
 0x546   :  { %p582_p8 = por %p581_p7, %p580_p6 }
 0x548   :  { %p583_p9 = pnand %p582_p8, %p576_p5 }
 0x58a   :  { %v368_v63 = vpop.f32.mrf.mxu0 }
 0x58b   :  { %373 = vst.msk [vmem:[#allocation2] sm:$0xff] %vm372_vm9, %v368_v63 }
 0x58c   :  { %v530_v0 = vpop.f32.mrf.mxu0 }
 0x5fd   :  { %v449_v1 = vpop.f32.mrf.mxu1 }
 0x5fe   :  { %454 = vst.msk [vmem:[#allocation2 + $0x8] sm:$0xff] %vm372_vm9, %v449_v1 }
 0x5ff   :  { %v537_v2 = vpop.f32.mrf.mxu1 }
 0x600   :  { %586 = shalt.err (!%p583_p9)
}
 0x601   :  { %466 = dma.vmem_to_hbm [thread:$0]  %s461_s25, 256, %s738_s6, [#allocation3], %s610_s20, %s610_s20, %s611_s21  }
 0x602   :  { %595 = dma.done.wait [#allocation3], 256  }
 0x603   :  { %596 = vsyncadd [#allocation3], 4294967040 }
 0x604   :  { %597 = dma.done.wait [#allocation5], 256  }
 0x605   :  { %598 = vsyncadd [#allocation5], 4294967040 }
 0x606   :  { %485 = vsyncpa [#allocation3], 1 }
 0x607   :  { %486 = vsyncpa [#allocation5], 1 }

</bundles_post_ra>
